<compile_context>
chip_gen: v5e
topology: v5e:2x2
jax: 0.10.0
libtpu: 0.0.40
codegen_flags: <defaults>
</compile_context>

<pallas_src>
import functools

import jax
import jax.numpy as jnp
from jax.experimental import pallas as pl
from jax.experimental.pallas import tpu as pltpu


def _round_up(v, m):
    return ((v + m - 1) // m) * m


def _pick_time_chunk(T):
    # Largest divisor of T that still gives >= 4 pipeline steps along time.
    cands = [d for d in range(1, T + 1) if T % d == 0 and T >= 4 * d]
    if cands:
        return max(cands)
    return 2 if T % 2 == 0 else 1


def _pick_batch_tile(Np):
    # 128-256 rows keep the serial matmul MXU-efficient; must divide Np and be
    # a multiple of 8.
    for cand in (256, 128, 64, 32, 16, 8):
        if Np >= cand and Np % cand == 0:
            return cand
    return Np


# ----------------------------------------------------------------------------
# Fused kernel: LAES recurrence over time chunks + deep readout MLP.
# Grid = (batch tiles [parallel], time chunks [arbitrary, trailing axis]).
# ----------------------------------------------------------------------------
def fused_kernel(
    x_ref,        # (tc, nb, Dinp)   time chunk of inputs      (compute dtype)
    a_ref,        # (Hp, Dinp)       LAES A                    (compute dtype)
    b_ref,        # (Hp, Hp)         LAES B                    (f32)
    b2_ref,       # (Hp, Hp)         B @ B                     (f32)
    bias_ref,     # (1, Dinp)        LAES mean/bias            (compute dtype)
    wh_ref,       # (Lh, Hp, Hp)     hidden readout weights    (compute dtype)
    bh_ref,       # (Lh, 1, Hp)      hidden readout biases     (f32)
    wo_ref,       # (Cp, Hp)         output weights (padded)   (compute dtype)
    bo_ref,       # (1, Cp)          output bias    (padded)   (f32)
    out_ref,      # (nb, Cp)         logits (padded), resident across time
    h_acc,        # VMEM (nb, Hp)                recurrent state (f32)
    pair_buf,     # VMEM (max(tc//2,1), nb, Hp)  paired-step RHS (f32)
    *,
    num_hidden,
):
    c = pl.program_id(1)

    @pl.when(c == 0)
    def _():
        h_acc[...] = jnp.zeros_like(h_acc)

    tc, nb, dinp = x_ref.shape
    hp = h_acc.shape[-1]
    pairs = tc // 2            # static
    rem = tc - 2 * pairs       # static (0 or 1)

    def mm_t(lhs, rhs):
        # lhs @ rhs.T via dot_general trans_b (no XLU transpose of weights).
        return jax.lax.dot_general(
            lhs, rhs,
            dimension_numbers=(((1,), (1,)), ((), ())),
            preferred_element_type=jnp.float32,
        )

    # ---- Phase 1 (fully parallel MXU work for the whole chunk) -------------
    # u_t = (x_t - bias) @ A.T, then fold time-step pairs into a single serial
    # step's RHS:  w_i = u_{2i} @ B.T + u_{2i+1}.
    # nb % 8 == 0, so these reshapes are pure sublane concats (no relayout).
    xc = (x_ref[...] - bias_ref[...]).reshape(tc * nb, dinp)
    u = mm_t(xc, a_ref[...]).reshape(tc, nb, hp)           # f32

    if pairs > 0:
        u2 = u[: 2 * pairs].reshape(pairs, 2 * nb, hp)     # [u_{2i}; u_{2i+1}]
        u_even = u2[:, :nb, :].reshape(pairs * nb, hp)
        u_odd = u2[:, nb:, :]
        pair_buf[...] = mm_t(u_even, b_ref[...]).reshape(pairs, nb, hp) + u_odd

    # ---- Phase 2 (the only truly serial work, chain halved via B^2) --------
    h = h_acc[...]
    if pairs > 0:
        def pair_step(i, hh):
            return mm_t(hh, b2_ref[...]) + pair_buf[i]
        h = jax.lax.fori_loop(0, pairs, pair_step, h, unroll=min(pairs, 8))
    if rem:
        h = mm_t(h, b_ref[...]) + u[tc - 1]
    h_acc[...] = h

    # ---- Phase 3: fused deep readout, only after the last time chunk -------
    @pl.when(c == pl.num_programs(1) - 1)
    def _():
        z = h_acc[...]
        for l in range(num_hidden):                    # static unroll
            z = jnp.tanh(mm_t(z.astype(wh_ref.dtype), wh_ref[l]) + bh_ref[l])
        out_ref[...] = (
            mm_t(z.astype(wo_ref.dtype), wo_ref[...]) + bo_ref[...]
        ).astype(out_ref.dtype)


# ----------------------------------------------------------------------------
# Wrapper: full module forward (LAES + deep readout) in one pallas_call.
# ----------------------------------------------------------------------------
def laes_deep_readout_forward(x, params, *, time_chunk=None, batch_tile=None,
                              compute_dtype=jnp.float32):
    """x: (T, N, Din) -> logits (N, C) float32.

    compute_dtype: dtype of the MXU operands for the A-projection and readout
    (use jnp.bfloat16 on v5e/v6e at scale); accumulation and the serial
    B-recurrence always stay f32.
    """
    T, N, Din = x.shape
    f32 = jnp.float32
    A = params["A"].astype(f32)                 # (H, Din)
    B = params["B"].astype(f32)                 # (H, H)
    mean = params["mean"].astype(f32)           # (Din,)
    w_hidden = params["w_hidden"].astype(f32)   # (Lh, H, H)
    b_hidden = params["b_hidden"].astype(f32)   # (Lh, H)
    w_out = params["w_out"].astype(f32)         # (C, H)
    b_out = params["b_out"].astype(f32)         # (C,)

    H = B.shape[0]
    Lh = w_hidden.shape[0]
    C = w_out.shape[0]

    # Lane-dense zero padding (padded hidden units stay exactly 0 -> same math).
    Hp = _round_up(H, 128)
    Dinp = _round_up(Din, 128)
    Cp = _round_up(C, 128)
    Np = _round_up(N, 8)

    A_p = jnp.pad(A, ((0, Hp - H), (0, Dinp - Din))).astype(compute_dtype)
    B_p = jnp.pad(B, ((0, Hp - H), (0, Hp - H)))                           # f32
    B2_p = jnp.dot(B_p, B_p, precision=jax.lax.Precision.HIGHEST)          # f32
    bias_p = jnp.pad(mean.reshape(1, Din),
                     ((0, 0), (0, Dinp - Din))).astype(compute_dtype)
    wh_p = jnp.pad(w_hidden, ((0, 0), (0, Hp - H), (0, Hp - H))).astype(compute_dtype)
    bh_p = jnp.pad(b_hidden, ((0, 0), (0, Hp - H))).reshape(Lh, 1, Hp)     # f32
    wo_p = jnp.pad(w_out, ((0, Cp - C), (0, Hp - H))).astype(compute_dtype)
    bo_p = jnp.pad(b_out.reshape(1, C), ((0, 0), (0, Cp - C)))             # f32
    x_p = jnp.pad(x.astype(f32),
                  ((0, 0), (0, Np - N), (0, Dinp - Din))).astype(compute_dtype)

    tc = _pick_time_chunk(T) if time_chunk is None else time_chunk
    nb = _pick_batch_tile(Np) if batch_tile is None else batch_tile
    assert T % tc == 0, "T must be divisible by the time chunk"
    assert Np % nb == 0 and nb % 8 == 0, "batch tile must divide padded N, %8==0"
    pairs = tc // 2

    # VMEM budget: double-buffered x block + scratch (h, paired RHS)
    # + double-buffered weights + double-buffered out block.  Re-derive tc/nb
    # against v7x (64 MiB physical / 32 MiB default scoped) when scaling up.
    op_bytes = jnp.dtype(compute_dtype).itemsize
    est = (
        2 * tc * nb * Dinp * op_bytes
        + (nb * Hp + max(pairs, 1) * nb * Hp) * 4
        + 2 * (Hp * Dinp + 2 * Hp * Hp + Lh * Hp * Hp) * op_bytes
        + 2 * (Dinp + Lh * Hp + Cp * Hp + Cp) * 4
        + 2 * nb * Cp * 4
    )
    vmem_limit = int(min(48 * 2**20, max(16 * 2**20, 2 * est)))

    grid = (Np // nb, T // tc)
    kernel = functools.partial(fused_kernel, num_hidden=Lh)

    out_padded = pl.pallas_call(
        kernel,
        out_shape=jax.ShapeDtypeStruct((Np, Cp), f32),
        grid_spec=pltpu.PrefetchScalarGridSpec(
            num_scalar_prefetch=0,
            grid=grid,
            in_specs=[
                pl.BlockSpec((tc, nb, Dinp), lambda b, c: (c, b, 0)),   # x
                pl.BlockSpec((Hp, Dinp), lambda b, c: (0, 0)),          # A
                pl.BlockSpec((Hp, Hp), lambda b, c: (0, 0)),            # B
                pl.BlockSpec((Hp, Hp), lambda b, c: (0, 0)),            # B^2
                pl.BlockSpec((1, Dinp), lambda b, c: (0, 0)),           # bias
                pl.BlockSpec((Lh, Hp, Hp), lambda b, c: (0, 0, 0)),     # w_hidden
                pl.BlockSpec((Lh, 1, Hp), lambda b, c: (0, 0, 0)),      # b_hidden
                pl.BlockSpec((Cp, Hp), lambda b, c: (0, 0)),            # w_out
                pl.BlockSpec((1, Cp), lambda b, c: (0, 0)),             # b_out
            ],
            out_specs=pl.BlockSpec((nb, Cp), lambda b, c: (b, 0)),
            scratch_shapes=[
                pltpu.VMEM((nb, Hp), f32),                    # recurrent state
                pltpu.VMEM((max(pairs, 1), nb, Hp), f32),     # paired-step RHS
            ],
        ),
        compiler_params=pltpu.CompilerParams(
            # Time must stay the trailing ("arbitrary") axis: out_ref is only
            # written on the last time chunk of each batch tile.
            dimension_semantics=("parallel", "arbitrary"),
            vmem_limit_bytes=vmem_limit,
        ),
    )(x_p, A_p, B_p, B2_p, bias_p, wh_p, bh_p, wo_p, bo_p)

    return out_padded[:N, :C]


# ----------------------------------------------------------------------------
# Pure-JAX reference for correctness checking.
# ----------------------------------------------------------------------------
def reference_forward(x, params):
    T, N, Din = x.shape
    H = params["B"].shape[0]
    h = jnp.zeros((N, H), jnp.float32)
    for t in range(T):
        h = (x[t] - params["mean"]) @ params["A"].T + h @ params["B"].T
    z = h
    for l in range(params["w_hidden"].shape[0]):
        z = jnp.tanh(z @ params["w_hidden"][l].T + params["b_hidden"][l])
    return z @ params["w_out"].T + params["b_out"]


if __name__ == "__main__":
    # Small, module-consistent shapes.
    T, N, Din = 8, 8, 16          # seq len, batch, input features
    mem_size = 32                 # H (LAES hidden / readout width)
    num_layers = 3                # -> 2 hidden Linear+Tanh, 1 final Linear
    num_classes = 10

    key = jax.random.PRNGKey(0)
    keys = jax.random.split(key, 8)

    # Deterministic synthetic parameters (the "pretrained LAES" is synthesized;
    # no checkpoint file is read).
    A = jax.random.normal(keys[0], (mem_size, Din), jnp.float32) * 0.1
    B = jax.random.normal(keys[1], (mem_size, mem_size), jnp.float32) * 0.1
    mean = jax.random.normal(keys[2], (Din,), jnp.float32) * 0.1

    Lh = num_layers - 1
    w_hidden = jax.random.normal(keys[3], (Lh, mem_size, mem_size), jnp.float32) * 0.1
    b_hidden = jax.random.normal(keys[4], (Lh, mem_size), jnp.float32) * 0.1
    w_out = jax.random.normal(keys[5], (num_classes, mem_size), jnp.float32) * 0.1
    b_out = jax.random.normal(keys[6], (num_classes,), jnp.float32) * 0.1

    params = dict(A=A, B=B, mean=mean, w_hidden=w_hidden, b_hidden=b_hidden,
                  w_out=w_out, b_out=b_out)

    x = jax.random.normal(keys[7], (T, N, Din), jnp.float32)

    out = laes_deep_readout_forward(x, params)
    out = jax.block_until_ready(out)

    with jax.default_matmul_precision("highest"):
        ref = jax.block_until_ready(reference_forward(x, params))

    assert out.shape == (N, num_classes)
    assert jnp.allclose(out, ref, atol=2e-3, rtol=2e-3), "mismatch vs reference"

    print("KERNEL_OK")
</pallas_src>

<mosaic_0001>
module attributes {stable_mosaic.version = 11 : i64} {
  func.func @fused_kernel(%arg0: i32, %arg1: i32, %arg2: memref<2x8x128xf32, #tpu.memory_space<vmem>>, %arg3: memref<128x128xf32, #tpu.memory_space<vmem>>, %arg4: memref<128x128xf32, #tpu.memory_space<vmem>>, %arg5: memref<128x128xf32, #tpu.memory_space<vmem>>, %arg6: memref<1x128xf32, #tpu.memory_space<vmem>>, %arg7: memref<2x128x128xf32, #tpu.memory_space<vmem>>, %arg8: memref<2x1x128xf32, #tpu.memory_space<vmem>>, %arg9: memref<128x128xf32, #tpu.memory_space<vmem>>, %arg10: memref<1x128xf32, #tpu.memory_space<vmem>>, %arg11: memref<8x128xf32, #tpu.memory_space<vmem>>, %arg12: memref<8x128xf32, #tpu.memory_space<vmem>>, %arg13: memref<1x8x128xf32, #tpu.memory_space<vmem>>) attributes {dimension_semantics = [#tpu.dimension_semantics<parallel>, #tpu.dimension_semantics<arbitrary>], iteration_bounds = array<i64: 1, 4>, scalar_prefetch = 0 : i64, scratch_operands = 2 : i64, tpu.core_type = #tpu.core_type<tc>, window_params = [{transform_indices = @transform_0, window_bounds = array<i64: 2, 8, 128>}, {pipeline_mode = #tpu.pipeline_mode<synchronous>, transform_indices = @transform_1, window_bounds = array<i64: 128, 128>}, {pipeline_mode = #tpu.pipeline_mode<synchronous>, transform_indices = @transform_2, window_bounds = array<i64: 128, 128>}, {pipeline_mode = #tpu.pipeline_mode<synchronous>, transform_indices = @transform_3, window_bounds = array<i64: 128, 128>}, {pipeline_mode = #tpu.pipeline_mode<synchronous>, transform_indices = @transform_4, window_bounds = array<i64: 1, 128>}, {pipeline_mode = #tpu.pipeline_mode<synchronous>, transform_indices = @transform_5, window_bounds = array<i64: 2, 128, 128>}, {pipeline_mode = #tpu.pipeline_mode<synchronous>, transform_indices = @transform_6, window_bounds = array<i64: 2, 1, 128>}, {pipeline_mode = #tpu.pipeline_mode<synchronous>, transform_indices = @transform_7, window_bounds = array<i64: 128, 128>}, {pipeline_mode = #tpu.pipeline_mode<synchronous>, transform_indices = @transform_8, window_bounds = array<i64: 1, 128>}, {transform_indices = @transform_9, window_bounds = array<i64: 8, 128>}]} {
    %c0_i32 = arith.constant 0 : i32
    %0 = arith.cmpi eq, %arg1, %c0_i32 : i32
    %1 = arith.extui %0 : i1 to i32
    %c0_i32_0 = arith.constant 0 : i32
    %2 = arith.cmpi ne, %1, %c0_i32_0 : i32
    scf.if %2 {
      %cst_24 = arith.constant 0.000000e+00 : f32
      %32 = vector.broadcast %cst_24 : f32 to vector<8x128xf32>
      %c0_25 = arith.constant 0 : index
      %c0_26 = arith.constant 0 : index
      %33 = vector.load %arg12[%c0_25, %c0_26] : memref<8x128xf32, #tpu.memory_space<vmem>>, vector<8x128xf32>
      tpu.vector_store %arg12[%c0_25, %c0_26], %32 {strides = array<i32>} : memref<8x128xf32, #tpu.memory_space<vmem>>, vector<8x128xf32>,
    } else {
    }
    %c0 = arith.constant 0 : index
    %c0_1 = arith.constant 0 : index
    %c0_2 = arith.constant 0 : index
    %3 = vector.load %arg2[%c0, %c0_1, %c0_2] : memref<2x8x128xf32, #tpu.memory_space<vmem>>, vector<2x8x128xf32>
    %c0_3 = arith.constant 0 : index
    %c0_4 = arith.constant 0 : index
    %4 = vector.load %arg6[%c0_3, %c0_4] : memref<1x128xf32, #tpu.memory_space<vmem>>, vector<1x128xf32>
    %5 = vector.shape_cast %4 : vector<1x128xf32> to vector<1x1x128xf32>
    %6 = vector.broadcast %5 : vector<1x1x128xf32> to vector<2x8x128xf32>
    %7 = arith.subf %3, %6 : vector<2x8x128xf32>
    %8 = vector.shape_cast %7 : vector<2x8x128xf32> to vector<16x128xf32>
    %c0_5 = arith.constant 0 : index
    %c0_6 = arith.constant 0 : index
    %9 = vector.load %arg3[%c0_5, %c0_6] : memref<128x128xf32, #tpu.memory_space<vmem>>, vector<128x128xf32>
    %cst = arith.constant dense<0.000000e+00> : vector<16x128xf32>
    %10 = tpu.matmul %8, %9, %cst {dimension_numbers = #tpu.dot_dimension_numbers<[1], [1], [0], [0], [0, 0, 1, 0], [], []>} : vector<16x128xf32>, vector<128x128xf32>, vector<16x128xf32> -> vector<16x128xf32>
    %11 = vector.shape_cast %10 : vector<16x128xf32> to vector<2x8x128xf32>
    %12 = vector.shape_cast %11 : vector<2x8x128xf32> to vector<1x16x128xf32>
    %13 = vector.extract_strided_slice %12 {offsets = [0, 0, 0], sizes = [1, 8, 128], strides = [1, 1, 1]} : vector<1x16x128xf32> to vector<1x8x128xf32>
    %14 = vector.shape_cast %13 : vector<1x8x128xf32> to vector<8x128xf32>
    %15 = vector.extract_strided_slice %12 {offsets = [0, 8, 0], sizes = [1, 8, 128], strides = [1, 1, 1]} : vector<1x16x128xf32> to vector<1x8x128xf32>
    %c0_7 = arith.constant 0 : index
    %c0_8 = arith.constant 0 : index
    %16 = vector.load %arg4[%c0_7, %c0_8] : memref<128x128xf32, #tpu.memory_space<vmem>>, vector<128x128xf32>
    %cst_9 = arith.constant dense<0.000000e+00> : vector<8x128xf32>
    %17 = tpu.matmul %14, %16, %cst_9 {dimension_numbers = #tpu.dot_dimension_numbers<[1], [1], [0], [0], [0, 0, 1, 0], [], []>} : vector<8x128xf32>, vector<128x128xf32>, vector<8x128xf32> -> vector<8x128xf32>
    %18 = vector.shape_cast %17 : vector<8x128xf32> to vector<1x8x128xf32>
    %19 = arith.addf %18, %15 : vector<1x8x128xf32>
    %c0_10 = arith.constant 0 : index
    %c0_11 = arith.constant 0 : index
    %c0_12 = arith.constant 0 : index
    %20 = vector.load %arg13[%c0_10, %c0_11, %c0_12] : memref<1x8x128xf32, #tpu.memory_space<vmem>>, vector<1x8x128xf32>
    tpu.vector_store %arg13[%c0_10, %c0_11, %c0_12], %19 {strides = array<i32>} : memref<1x8x128xf32, #tpu.memory_space<vmem>>, vector<1x8x128xf32>,
    %c0_13 = arith.constant 0 : index
    %c0_14 = arith.constant 0 : index
    %21 = vector.load %arg12[%c0_13, %c0_14] : memref<8x128xf32, #tpu.memory_space<vmem>>, vector<8x128xf32>
    %c0_i32_15 = arith.constant 0 : i32
    %c0_16 = arith.constant 0 : index
    %c0_17 = arith.constant 0 : index
    %22 = vector.load %arg5[%c0_16, %c0_17] : memref<128x128xf32, #tpu.memory_space<vmem>>, vector<128x128xf32>
    %cst_18 = arith.constant dense<0.000000e+00> : vector<8x128xf32>
    %23 = tpu.matmul %21, %22, %cst_18 {dimension_numbers = #tpu.dot_dimension_numbers<[1], [1], [0], [0], [0, 0, 1, 0], [], []>} : vector<8x128xf32>, vector<128x128xf32>, vector<8x128xf32> -> vector<8x128xf32>
    %24 = arith.index_cast %c0_i32_15 : i32 to index
    %c0_19 = arith.constant 0 : index
    %c0_20 = arith.constant 0 : index
    %25 = vector.load %arg13[%24, %c0_19, %c0_20] : memref<1x8x128xf32, #tpu.memory_space<vmem>>, vector<1x8x128xf32>
    %26 = vector.shape_cast %25 : vector<1x8x128xf32> to vector<8x128xf32>
    %27 = arith.addf %23, %26 : vector<8x128xf32>
    %c1_i32 = arith.constant 1 : i32
    %c0_21 = arith.constant 0 : index
    %c0_22 = arith.constant 0 : index
    %28 = vector.load %arg12[%c0_21, %c0_22] : memref<8x128xf32, #tpu.memory_space<vmem>>, vector<8x128xf32>
    tpu.vector_store %arg12[%c0_21, %c0_22], %27 {strides = array<i32>} : memref<8x128xf32, #tpu.memory_space<vmem>>, vector<8x128xf32>,
    %c3_i32 = arith.constant 3 : i32
    %29 = arith.cmpi eq, %arg1, %c3_i32 : i32
    %30 = arith.extui %29 : i1 to i32
    %c0_i32_23 = arith.constant 0 : i32
    %31 = arith.cmpi ne, %30, %c0_i32_23 : i32
    scf.if %31 {
      %c0_24 = arith.constant 0 : index
      %c0_25 = arith.constant 0 : index
      %32 = vector.load %arg12[%c0_24, %c0_25] : memref<8x128xf32, #tpu.memory_space<vmem>>, vector<8x128xf32>
      %c0_26 = arith.constant 0 : index
      %c0_27 = arith.constant 0 : index
      %c0_28 = arith.constant 0 : index
      %33 = vector.load %arg7[%c0_26, %c0_27, %c0_28] : memref<2x128x128xf32, #tpu.memory_space<vmem>>, vector<1x128x128xf32>
      %34 = vector.shape_cast %33 : vector<1x128x128xf32> to vector<128x128xf32>
      %cst_29 = arith.constant dense<0.000000e+00> : vector<8x128xf32>
      %35 = tpu.matmul %32, %34, %cst_29 {dimension_numbers = #tpu.dot_dimension_numbers<[1], [1], [0], [0], [0, 0, 1, 0], [], []>} : vector<8x128xf32>, vector<128x128xf32>, vector<8x128xf32> -> vector<8x128xf32>
      %c0_30 = arith.constant 0 : index
      %c0_31 = arith.constant 0 : index
      %c0_32 = arith.constant 0 : index
      %36 = vector.load %arg8[%c0_30, %c0_31, %c0_32] : memref<2x1x128xf32, #tpu.memory_space<vmem>>, vector<1x1x128xf32>
      %37 = vector.shape_cast %36 : vector<1x1x128xf32> to vector<1x128xf32>
      %38 = vector.broadcast %37 : vector<1x128xf32> to vector<8x128xf32>
      %39 = arith.addf %35, %38 : vector<8x128xf32>
      %40 = math.tanh %39 : vector<8x128xf32>
      %c1 = arith.constant 1 : index
      %c0_33 = arith.constant 0 : index
      %c0_34 = arith.constant 0 : index
      %41 = vector.load %arg7[%c1, %c0_33, %c0_34] : memref<2x128x128xf32, #tpu.memory_space<vmem>>, vector<1x128x128xf32>
      %42 = vector.shape_cast %41 : vector<1x128x128xf32> to vector<128x128xf32>
      %cst_35 = arith.constant dense<0.000000e+00> : vector<8x128xf32>
      %43 = tpu.matmul %40, %42, %cst_35 {dimension_numbers = #tpu.dot_dimension_numbers<[1], [1], [0], [0], [0, 0, 1, 0], [], []>} : vector<8x128xf32>, vector<128x128xf32>, vector<8x128xf32> -> vector<8x128xf32>
      %c1_36 = arith.constant 1 : index
      %c0_37 = arith.constant 0 : index
      %c0_38 = arith.constant 0 : index
      %44 = vector.load %arg8[%c1_36, %c0_37, %c0_38] : memref<2x1x128xf32, #tpu.memory_space<vmem>>, vector<1x1x128xf32>
      %45 = vector.shape_cast %44 : vector<1x1x128xf32> to vector<1x128xf32>
      %46 = vector.broadcast %45 : vector<1x128xf32> to vector<8x128xf32>
      %47 = arith.addf %43, %46 : vector<8x128xf32>
      %48 = math.tanh %47 : vector<8x128xf32>
      %c0_39 = arith.constant 0 : index
      %c0_40 = arith.constant 0 : index
      %49 = vector.load %arg9[%c0_39, %c0_40] : memref<128x128xf32, #tpu.memory_space<vmem>>, vector<128x128xf32>
      %cst_41 = arith.constant dense<0.000000e+00> : vector<8x128xf32>
      %50 = tpu.matmul %48, %49, %cst_41 {dimension_numbers = #tpu.dot_dimension_numbers<[1], [1], [0], [0], [0, 0, 1, 0], [], []>} : vector<8x128xf32>, vector<128x128xf32>, vector<8x128xf32> -> vector<8x128xf32>
      %c0_42 = arith.constant 0 : index
      %c0_43 = arith.constant 0 : index
      %51 = vector.load %arg10[%c0_42, %c0_43] : memref<1x128xf32, #tpu.memory_space<vmem>>, vector<1x128xf32>
      %52 = vector.broadcast %51 : vector<1x128xf32> to vector<8x128xf32>
      %53 = arith.addf %50, %52 : vector<8x128xf32>
      %c0_44 = arith.constant 0 : index
      %c0_45 = arith.constant 0 : index
      %54 = vector.load %arg11[%c0_44, %c0_45] : memref<8x128xf32, #tpu.memory_space<vmem>>, vector<8x128xf32>
      tpu.vector_store %arg11[%c0_44, %c0_45], %53 {strides = array<i32>} : memref<8x128xf32, #tpu.memory_space<vmem>>, vector<8x128xf32>,
    } else {
    }
    return
  }
  func.func @transform_0(%arg0: i32, %arg1: i32) -> (i32, i32, i32) {
    %c0_i32 = arith.constant 0 : i32
    %c0_i32_0 = arith.constant 0 : i32
    return %arg1, %arg0, %c0_i32 : i32, i32, i32
  }
  func.func @transform_1(%arg0: i32, %arg1: i32) -> (i32, i32) {
    %c0_i32 = arith.constant 0 : i32
    %c0_i32_0 = arith.constant 0 : i32
    %c0_i32_1 = arith.constant 0 : i32
    return %c0_i32, %c0_i32_0 : i32, i32
  }
  func.func @transform_2(%arg0: i32, %arg1: i32) -> (i32, i32) {
    %c0_i32 = arith.constant 0 : i32
    %c0_i32_0 = arith.constant 0 : i32
    %c0_i32_1 = arith.constant 0 : i32
    return %c0_i32, %c0_i32_0 : i32, i32
  }
  func.func @transform_3(%arg0: i32, %arg1: i32) -> (i32, i32) {
    %c0_i32 = arith.constant 0 : i32
    %c0_i32_0 = arith.constant 0 : i32
    %c0_i32_1 = arith.constant 0 : i32
    return %c0_i32, %c0_i32_0 : i32, i32
  }
  func.func @transform_4(%arg0: i32, %arg1: i32) -> (i32, i32) {
    %c0_i32 = arith.constant 0 : i32
    %c0_i32_0 = arith.constant 0 : i32
    %c0_i32_1 = arith.constant 0 : i32
    return %c0_i32, %c0_i32_0 : i32, i32
  }
  func.func @transform_5(%arg0: i32, %arg1: i32) -> (i32, i32, i32) {
    %c0_i32 = arith.constant 0 : i32
    %c0_i32_0 = arith.constant 0 : i32
    %c0_i32_1 = arith.constant 0 : i32
    %c0_i32_2 = arith.constant 0 : i32
    return %c0_i32, %c0_i32_0, %c0_i32_1 : i32, i32, i32
  }
  func.func @transform_6(%arg0: i32, %arg1: i32) -> (i32, i32, i32) {
    %c0_i32 = arith.constant 0 : i32
    %c0_i32_0 = arith.constant 0 : i32
    %c0_i32_1 = arith.constant 0 : i32
    %c0_i32_2 = arith.constant 0 : i32
    return %c0_i32, %c0_i32_0, %c0_i32_1 : i32, i32, i32
  }
  func.func @transform_7(%arg0: i32, %arg1: i32) -> (i32, i32) {
    %c0_i32 = arith.constant 0 : i32
    %c0_i32_0 = arith.constant 0 : i32
    %c0_i32_1 = arith.constant 0 : i32
    return %c0_i32, %c0_i32_0 : i32, i32
  }
  func.func @transform_8(%arg0: i32, %arg1: i32) -> (i32, i32) {
    %c0_i32 = arith.constant 0 : i32
    %c0_i32_0 = arith.constant 0 : i32
    %c0_i32_1 = arith.constant 0 : i32
    return %c0_i32, %c0_i32_0 : i32, i32
  }
  func.func @transform_9(%arg0: i32, %arg1: i32) -> (i32, i32) {
    %c0_i32 = arith.constant 0 : i32
    %c0_i32_0 = arith.constant 0 : i32
    return %arg0, %c0_i32 : i32, i32
  }
}

</mosaic_0001>

<bundles_post_ra>
// kernel: tpu_custom_call.1
= control target key start
LH: loop header
LB: loop body
LE: loop exit
PB: predicated region body
PF: predicated region fallthrough
CT: control target
= control target key end

     0   :  { %s1516_s0 = inlined_call_operand.hbm [shape: f32[8,8,128], index: 0, kind: input, shape index: {}]   ;;  %s1517_s1 = inlined_call_operand.hbm [shape: f32[128,128], index: 1, kind: input, shape index: {}]   ;;  %s1518_s2 = inlined_call_operand.hbm [shape: f32[128,128], index: 2, kind: input, shape index: {}]   ;;  %s1519_s3 = inlined_call_operand.hbm [shape: f32[128,128], index: 3, kind: input, shape index: {}]   ;;  %s1520_s4 = inlined_call_operand.vmem [shape: f32[1,128], index: 4, kind: input, shape index: {}]   ;;  %s1521_s5 = inlined_call_operand.hbm [shape: f32[2,128,128], index: 5, kind: input, shape index: {}]   ;;  %s1522_s6 = inlined_call_operand.vmem [shape: f32[2,1,128], index: 6, kind: input, shape index: {}]   ;;  %s1523_s7 = inlined_call_operand.hbm [shape: f32[128,128], index: 7, kind: input, shape index: {}]   ;;  %s1524_s8 = inlined_call_operand.vmem [shape: f32[1,128], index: 8, kind: input, shape index: {}]   ;;  %s1525_s9 = inlined_call_operand.hbm [shape: f32[8,128], index: 9, kind: output, shape index: {}]  }
   0x1   :  { %1529 = sst [smem:[#allocation21_spill]] %s1517_s1 }
   0x2   :  { %1530 = sst [smem:[#allocation22_spill]] %s1518_s2 }
   0x3   :  { %1531 = sst [smem:[#allocation23_spill]] %s1519_s3 }
   0x4   :  { %14 = vsyncpa [#allocation5], 0 }
   0x5   :  { %16 = vsyncpa [#allocation5 + $0x1], 0 }
   0x6   :  { %17 = vsyncpa [#allocation8], 0 }
   0x7   :  { %18 = vsyncpa [#allocation11], 0 }
   0x8   :  { %19 = vsyncpa [#allocation14], 0 }
   0x9   :  { %20 = vsyncpa [#allocation6], 0  ;;  %s1327_s30 = smov 0   ;;  %s1329_s10 = smov 0  }
   0xa   :  { %s1331_s11 = smov 0   ;;  %s1333_s12 = smov 0  }
   0xb   :  { %s1335_s13 = smov 0   ;;  %s1337_s14 = smov 0  }
   0xc LB: > { %s1526_s15 = sadd.s32 4294967295, %s1266_s14   ;;  %p827_p0 = scmp.ge.s32.totalorder %s1266_s14, 1  ;;  %s1266_s14 = sphi %s1337_s14, %s26_s14   ;;  %s1262_s13 = sphi %s1335_s13, %s1547_s13   ;;  %s1258_s12 = sphi %s1333_s12, %s1546_s12   ;;  %s1254_s11 = sphi %s1331_s11, %s1545_s11   ;;  %s1250_s10 = sphi %s1329_s10, %s1544_s10   ;;  %s1246_s30 = sphi %s1327_s30, %s1543_s30  }
   0xd   : > { %p1361_p1 = scmp.eq.s32.totalorder %s1526_s15, 0  ;;  %p265_p2 = scmp.lt.s32.totalorder %s1266_s14, 5 }
   0xe   : > { %s1533_s1 = sld [smem:[#allocation21_spill]]  ;;  %s1268_s21 = smov [#allocation7]  }
   0xf   : > { %p1369_p3 = pnand %p827_p0, %p265_p2  ;;  %s278_s22 = sshll.u32 %s1268_s21, 4  ;;  %s279_s22 = int_to_ptr.vmem [resolvable:$true] %s278_s22 }
  0x10   : > { %s1536_s3 = sld [smem:[#allocation23_spill]]  ;;  %s1527_s27 = smov 128  }
  0x11   : > { %p894_p4 = pneg %p1369_p3  ;;  %s1528_s28 = smov 8  }
  0x12   : > { %s1271_s29 = smov [#allocation10]   ;;  %s1537_s2 = sld [smem:[#allocation22_spill]] }
  0x13   : > { %p1377_p5 = pnand %p894_p4, %p1361_p1  ;;  %s306_s17 = sshll.u32 %s1271_s29, 4  ;;  %s307_s17 = int_to_ptr.vmem [resolvable:$true] %s306_s17 }
  0x14   : > { %s276_s19 = sshll.u32 %s1533_s1, 4  ;;  %s321_s1 = sshll.u32 %s1521_s5, 4  ;;  %s277_s19 = int_to_ptr.hbm [resolvable:$true] %s276_s19  ;;  %s322_s1 = int_to_ptr.hbm [resolvable:$true] %s321_s1 }
  0x15   : > { %897 = dma.hbm_to_vmem [thread:$0]  (!%p1377_p5), %s277_s19, 2048, %s279_s22, [#allocation8], %s1527_s27, %s1527_s27, %s1528_s28  }
  0x16   : > { %s304_s26 = sshll.u32 %s1536_s3, 4  ;;  %s1272_s19 = smov [#allocation9]   ;;  %s305_s26 = int_to_ptr.hbm [resolvable:$true] %s304_s26 }
  0x17   : > { %903 = dma.hbm_to_vmem [thread:$0]  (!%p1377_p5), %s305_s26, 2048, %s307_s17, [#allocation11], %s1527_s27, %s1527_s27, %s1528_s28  }
  0x18   : > { %s290_s15 = sshll.u32 %s1537_s2, 4  ;;  %s292_s22 = sshll.u32 %s1272_s19, 4  ;;  %s291_s15 = int_to_ptr.hbm [resolvable:$true] %s290_s15  ;;  %s293_s22 = int_to_ptr.vmem [resolvable:$true] %s292_s22 }
  0x19   : > { %900 = dma.hbm_to_vmem [thread:$0]  (!%p1377_p5), %s291_s15, 2048, %s293_s22, [#allocation8], %s1527_s27, %s1527_s27, %s1528_s28  }
  0x1a   : > { %s1273_s26 = smov [#allocation12]   ;;  %s338_s21 = sshll.u32 %s1523_s7, 4  ;;  %s339_s21 = int_to_ptr.hbm [resolvable:$true] %s338_s21 }
  0x1b   : > { %s323_s29 = sshll.u32 %s1273_s26, 4  ;;  %s1274_s15 = smov [#allocation13]   ;;  %s324_s29 = int_to_ptr.vmem [resolvable:$true] %s323_s29 }
  0x1c   : > { %906 = dma.hbm_to_vmem [thread:$0]  (!%p1377_p5), %s322_s1, 4096, %s324_s29, [#allocation11], %s1527_s27, %s1527_s27, %s1528_s28  }
  0x1d   : > { %s340_s24 = sshll.u32 %s1274_s15, 4  ;;  %s35_s25 = sadd.s32 1, %s1262_s13  ;;  %s341_s24 = int_to_ptr.vmem [resolvable:$true] %s340_s24 }
  0x1e   : > { %909 = dma.hbm_to_vmem [thread:$0]  (!%p1377_p5), %s339_s21, 2048, %s341_s24, [#allocation14], %s1527_s27, %s1527_s27, %s1528_s28  }
  0x1f   : > { %p36_p6 = scmp.ge.s32.totalorder %s35_s25, 4  ;;  %p54_p7 = scmp.ne.s32.totalorder %s1254_s11, %s1250_s10 }
  0x20   : > { %p55_p8 = scmp.eq.s32.totalorder %s1266_s14, 0  ;;  %s47_s1 = sadd.s32 1, %s1254_s11 }
  0x21   : > { %s1549_s25 = smov (%p36_p6, %s35_s25), 0  ;;  %p60_p9 = scmp.ne.s32.totalorder %s1250_s10, %s1246_s30 }
  0x22   : > { %s42_s19 = ssub.s32 %s1262_s13, %s1549_s25  ;;  %p1429_p10 = por %p55_p8, %p54_p7 }
  0x23   : > { %p45_p11 = scmp.eq.s32.totalorder %s42_s19, 0  ;;  %p1435_p12 = por %p1361_p1, %p60_p9 }
  0x24   : > { %s357_s26 = sand.u32 1, %s1254_s11   ;;  %s851_s29 = sshll.u32 %s1262_s13, 4 }
  0x25   : > { %s1442_s17 = scalar_select %p45_p11, %s1254_s11, %s47_s1  }
  0x26   : > { %p919_p13 = scmp.lt.s32.totalorder %s1266_s14, 4  ;;  %s834_s18 = sshll.u32 %s357_s26, 4 }
  0x27   : > { %s367_s15 = scalar_lea.hbm %s1516_s0, %s851_s29  ;;  %s361_s27 = scalar_lea.vmem [#allocation4], %s834_s18 }
  0x28   : > { %s368_s24 = sshll.u32 %s367_s15, 4  ;;  %s370_s28 = sshll.u32 %s361_s27, 4  ;;  %s369_s24 = int_to_ptr.hbm [resolvable:$true] %s368_s24  ;;  %s371_s28 = int_to_ptr.vmem [resolvable:$true] %s370_s28 }
  0x29   : > { %p911_p0 = pnand %p919_p13, %p1429_p10  ;;  %s358_s19 = scalar_lea.sflag [#allocation5], %s357_s26 }
  0x2a   : > { %s1540_s2 = smov 8   ;;  %s1541_s3 = smov 128  }
  0x2b   : > { %913 = dma.hbm_to_vmem [thread:$0]  (!%p911_p0), %s369_s24, 256, %s371_s28, %s358_s19, %s1541_s3, %s1541_s3, %s1540_s2  }
  0x2c   : > { %382 = sbr.rel (%p1369_p3) target bundleno = 861 (0x35d), region = 56  ;;  %s384_s1 = sand.u32 (!%p1369_p3), 1, %s1250_s10  }
  0x2d   : > { %s1456_s21 = sshll.u32 (!%p1369_p3), %s384_s1, 4  ;;  %s385_s29 = scalar_lea.sflag (!%p1369_p3), [#allocation5], %s384_s1 }
  0x2e   : > { %s388_s27 = scalar_lea.vmem (!%p1369_p3), [#allocation4], %s1456_s21 }
  0x31   : > { %1225 = dma.done.wait (%p1435_p12), %s385_s29, 256  }
  0x32   : > { %1227 = vsyncadd (%p1435_p12), %s385_s29, 4294967040 }
  0x33   : > { %1229 = dma.done.wait (%p1361_p1), [#allocation8], 4096  }
  0x34   : > { %1231 = vsyncadd (%p1361_p1), [#allocation8], 4294963200 }
  0x35   : > { %1233 = dma.done.wait (%p1361_p1), [#allocation11], 6144  }
  0x36   : > { %1235 = vsyncadd (%p1361_p1), [#allocation11], 4294961152 }
  0x37   : > { %1237 = dma.done.wait (%p1361_p1), [#allocation14], 2048  }
  0x38   : > { %1239 = vsyncadd (%p1361_p1), [#allocation14], 4294965248  ;;  %p844_p2 = scmp.ne.s32.totalorder %s1258_s12, 0 }
  0x3a   : > { %448 = sbr.rel (%p844_p2) target bundleno = 65 (0x41), region = 84 }
  0x3f   : > { %v1275_v0 = vmov 0.0  }
  0x40   : > { %449 = vst [vmem:[#allocation2] sm:$0xff] %v1275_v0 }
  0x41 PF: > { %v473_v1 = vld [vmem:[#allocation7 + $0x78] sm:$0xff]  ;;  %v472_v2 = vld [vmem:[#allocation7 + $0x70] sm:$0xff]  ;;  %v471_v3 = vld [vmem:[#allocation7 + $0x68] sm:$0xff]  ;;  %p845_p1 = scmp.ne.s32.totalorder %s1258_s12, 3 }
  0x42   : > { %474 = vmatpush.xpose.msra.mxu0 %v473_v1  ;;  %852 = vmatpush.xpose.msra.mxu3 %v473_v1  ;;  %v470_v4 = vld [vmem:[#allocation7 + $0x60] sm:$0xff]  ;;  %v469_v5 = vld [vmem:[#allocation7 + $0x58] sm:$0xff]  ;;  %v468_v6 = vld [vmem:[#allocation7 + $0x50] sm:$0xff] }
  0x43   : > { %v467_v7 = vld [vmem:[#allocation7 + $0x48] sm:$0xff]  ;;  %v466_v8 = vld [vmem:[#allocation7 + $0x40] sm:$0xff]  ;;  %v465_v9 = vld [vmem:[#allocation7 + $0x38] sm:$0xff] }
  0x44   : > { %v551_v10 = vld [vmem:[#allocation10 + $0x78] sm:$0xff]  ;;  %v464_v12 = vld [vmem:[#allocation7 + $0x30] sm:$0xff]  ;;  %v463_v15 = vld [vmem:[#allocation7 + $0x28] sm:$0xff] }
  0x45   : > { %v512_v11 = vld [vmem:[#allocation9 + $0x78] sm:$0xff]  ;;  %553 = vmatpush.xpose.msra.mxu2 %v551_v10  ;;  %v550_v13 = vld [vmem:[#allocation10 + $0x70] sm:$0xff]  ;;  %v549_v16 = vld [vmem:[#allocation10 + $0x68] sm:$0xff] }
  0x46   : > { %475 = vmatpush.xpose.msra.mxu0 %v472_v2  ;;  %853 = vmatpush.xpose.msra.mxu3 %v472_v2  ;;  %v511_v14 = vld [vmem:[#allocation9 + $0x70] sm:$0xff]  ;;  %v510_v17 = vld [vmem:[#allocation9 + $0x68] sm:$0xff]  ;;  %v462_v18 = vld [vmem:[#allocation7 + $0x20] sm:$0xff] }
  0x47   : > { %513 = vmatpush.xpose.msra.mxu1 %v512_v11  ;;  %v548_v19 = vld [vmem:[#allocation10 + $0x60] sm:$0xff]  ;;  %v461_v21 = vld [vmem:[#allocation7 + $0x18] sm:$0xff]  ;;  %v460_v24 = vld [vmem:[#allocation7 + $0x10] sm:$0xff] }
  0x48   : > { %v509_v20 = vld [vmem:[#allocation9 + $0x60] sm:$0xff]  ;;  %v547_v22 = vld [vmem:[#allocation10 + $0x58] sm:$0xff]  ;;  %v546_v25 = vld [vmem:[#allocation10 + $0x50] sm:$0xff] }
  0x49   : > { %554 = vmatpush.xpose.msra.mxu2 %v550_v13  ;;  %v508_v23 = vld [vmem:[#allocation9 + $0x58] sm:$0xff]  ;;  %v507_v26 = vld [vmem:[#allocation9 + $0x50] sm:$0xff]  ;;  %v459_v27 = vld [vmem:[#allocation7 + $0x8] sm:$0xff] }
  0x4a   : > { %476 = vmatpush.xpose.msra.mxu0 %v471_v3  ;;  %854 = vmatpush.xpose.msra.mxu3 %v471_v3  ;;  %v545_v28 = vld [vmem:[#allocation10 + $0x48] sm:$0xff]  ;;  %v984_v30 = vld [vmem:[%s1520_s4] ss:$0 sm:$0xff]  ;;  %v450_v31 = vld [vmem:[%s388_s27] sm:$0xff] }
  0x4b   : > { %514 = vmatpush.xpose.msra.mxu1 %v511_v14  ;;  %v506_v29 = vld [vmem:[#allocation9 + $0x48] sm:$0xff]  ;;  %v458_v32 = vld [vmem:[#allocation7] sm:$0xff]  ;;  %v456_v35 = vsub.f32 %v450_v31, %v984_v30  ;;  %v543_v37 = vld [vmem:[#allocation10 + $0x38] sm:$0xff] }
  0x4c   : > { %v544_v33 = vld [vmem:[#allocation10 + $0x40] sm:$0xff]  ;;  %v451_v36 = vld [vmem:[%s388_s27 + $0x8] sm:$0xff]  ;;  %v542_v40 = vld [vmem:[#allocation10 + $0x30] sm:$0xff] }
  0x4d   : > { %555 = vmatpush.xpose.msra.mxu2 %v549_v16  ;;  %v505_v34 = vld [vmem:[#allocation9 + $0x40] sm:$0xff]  ;;  %v457_v38 = vsub.f32 %v451_v36, %v984_v30  ;;  %v504_v39 = vld [vmem:[#allocation9 + $0x38] sm:$0xff]  ;;  %v503_v41 = vld [vmem:[#allocation9 + $0x30] sm:$0xff] }
  0x4e   : > { %477 = vmatpush.xpose.msra.mxu0 %v470_v4  ;;  %855 = vmatpush.xpose.msra.mxu3 %v470_v4  ;;  %v541_v42 = vld [vmem:[#allocation10 + $0x28] sm:$0xff]  ;;  %v540_v44 = vld [vmem:[#allocation10 + $0x20] sm:$0xff]  ;;  %v539_v46 = vld [vmem:[#allocation10 + $0x18] sm:$0xff] }
  0x4f   : > { %515 = vmatpush.xpose.msra.mxu1 %v510_v17  ;;  %v502_v43 = vld [vmem:[#allocation9 + $0x28] sm:$0xff]  ;;  %v501_v45 = vld [vmem:[#allocation9 + $0x20] sm:$0xff]  ;;  %v500_v47 = vld [vmem:[#allocation9 + $0x18] sm:$0xff] }
  0x50   : > { %v538_v48 = vld [vmem:[#allocation10 + $0x10] sm:$0xff]  ;;  %v537_v50 = vld [vmem:[#allocation10 + $0x8] sm:$0xff]  ;;  %v536_v52 = vld [vmem:[#allocation10] sm:$0xff] }
  0x51   : > { %556 = vmatpush.xpose.msra.mxu2 %v548_v19  ;;  %v499_v49 = vld [vmem:[#allocation9 + $0x10] sm:$0xff]  ;;  %v498_v51 = vld [vmem:[#allocation9 + $0x8] sm:$0xff]  ;;  %v497_v53 = vld [vmem:[#allocation9] sm:$0xff] }
  0x52   : > { %478 = vmatpush.xpose.msra.mxu0 %v469_v5  ;;  %856 = vmatpush.xpose.msra.mxu3 %v469_v5  ;;  %v535_v54 = vld [vmem:[#allocation2] sm:$0xff] }
  0x53   : > { %516 = vmatpush.xpose.msra.mxu1 %v509_v20 }
  0x55   : > { %557 = vmatpush.xpose.msra.mxu2 %v547_v22 }
  0x56   : > { %479 = vmatpush.xpose.msra.mxu0 %v468_v6  ;;  %857 = vmatpush.xpose.msra.mxu3 %v468_v6 }
  0x57   : > { %517 = vmatpush.xpose.msra.mxu1 %v508_v23 }
  0x59   : > { %558 = vmatpush.xpose.msra.mxu2 %v546_v25 }
  0x5a   : > { %480 = vmatpush.xpose.msra.mxu0 %v467_v7  ;;  %858 = vmatpush.xpose.msra.mxu3 %v467_v7 }
  0x5b   : > { %518 = vmatpush.xpose.msra.mxu1 %v507_v26 }
  0x5d   : > { %559 = vmatpush.xpose.msra.mxu2 %v545_v28 }
  0x5e   : > { %481 = vmatpush.xpose.msra.mxu0 %v466_v8  ;;  %859 = vmatpush.xpose.msra.mxu3 %v466_v8 }
  0x5f   : > { %519 = vmatpush.xpose.msra.mxu1 %v506_v29 }
  0x61   : > { %560 = vmatpush.xpose.msra.mxu2 %v544_v33 }
  0x62   : > { %482 = vmatpush.xpose.msra.mxu0 %v465_v9  ;;  %860 = vmatpush.xpose.msra.mxu3 %v465_v9 }
  0x63   : > { %520 = vmatpush.xpose.msra.mxu1 %v505_v34 }
  0x65   : > { %561 = vmatpush.xpose.msra.mxu2 %v543_v37 }
  0x66   : > { %483 = vmatpush.xpose.msra.mxu0 %v464_v12  ;;  %861 = vmatpush.xpose.msra.mxu3 %v464_v12 }
  0x67   : > { %521 = vmatpush.xpose.msra.mxu1 %v504_v39 }
  0x69   : > { %562 = vmatpush.xpose.msra.mxu2 %v542_v40 }
  0x6a   : > { %484 = vmatpush.xpose.msra.mxu0 %v463_v15  ;;  %862 = vmatpush.xpose.msra.mxu3 %v463_v15 }
  0x6b   : > { %522 = vmatpush.xpose.msra.mxu1 %v503_v41 }
  0x6d   : > { %563 = vmatpush.xpose.msra.mxu2 %v541_v42 }
  0x6e   : > { %485 = vmatpush.xpose.msra.mxu0 %v462_v18  ;;  %863 = vmatpush.xpose.msra.mxu3 %v462_v18 }
  0x6f   : > { %523 = vmatpush.xpose.msra.mxu1 %v502_v43 }
  0x71   : > { %564 = vmatpush.xpose.msra.mxu2 %v540_v44 }
  0x72   : > { %486 = vmatpush.xpose.msra.mxu0 %v461_v21  ;;  %864 = vmatpush.xpose.msra.mxu3 %v461_v21 }
  0x73   : > { %524 = vmatpush.xpose.msra.mxu1 %v501_v45 }
  0x75   : > { %565 = vmatpush.xpose.msra.mxu2 %v539_v46 }
  0x76   : > { %487 = vmatpush.xpose.msra.mxu0 %v460_v24  ;;  %865 = vmatpush.xpose.msra.mxu3 %v460_v24 }
  0x77   : > { %525 = vmatpush.xpose.msra.mxu1 %v500_v47 }
  0x79   : > { %566 = vmatpush.xpose.msra.mxu2 %v538_v48 }
  0x7a   : > { %488 = vmatpush.xpose.msra.mxu0 %v459_v27  ;;  %866 = vmatpush.xpose.msra.mxu3 %v459_v27 }
  0x7b   : > { %526 = vmatpush.xpose.msra.mxu1 %v499_v49 }
  0x7d   : > { %567 = vmatpush.xpose.msra.mxu2 %v537_v50 }
  0x7e   : > { %489 = vmatpush.xpose.msra.mxu0 %v458_v32  ;;  %867 = vmatpush.xpose.msra.mxu3 %v458_v32 }
  0x7f   : > { %527 = vmatpush.xpose.msra.mxu1 %v498_v51 }
  0x81   : > { %490 = vmatmul.f32.vlgmr.msra.gmra.mxu0 %v456_v35  ;;  %493 = vmatmul.f32.vlgmr.msra.gmra.mxu3 %v457_v38 }
  0x82   : > { %568 = vmatpush.xpose.msra.mxu2 %v536_v52 }
  0x83   : > { %528 = vmatpush.xpose.msra.mxu1 %v497_v53 }
  0x85   : > { %569 = vmatmul.f32.vlgmr.msra.gmra.mxu2 %v535_v54 }
  0xfe   : > { %v491_v55 = vpop.f32.mrf.mxu0 }
  0xff   : > { %529 = vmatmul.f32.vlgmr.msra.gmra.mxu1 %v491_v55 }
 0x104   : > { %v494_v56 = vpop.f32.mrf.mxu3 }
 0x108   : > { %v570_v58 = vpop.f32.mrf.mxu2 }
 0x17c   : > { %v530_v57 = vpop.f32.mrf.mxu1 }
 0x17d   : > { %v533_v59 = vadd.f32 %v530_v57, %v494_v56  ;;  %577 = sbr.rel (%p845_p1) target bundleno = 855 (0x357), region = 88 }
 0x17f   : > { %v571_v60 = vadd.f32 %v570_v58, %v533_v59 }
 0x181   : > { %573 = vst [vmem:[#allocation2] sm:$0xff] %v571_v60 }
 0x182   : > { %v594_v61 = vld [vmem:[#allocation12 + $0x78] sm:$0xff]  ;;  %v593_v62 = vld [vmem:[#allocation12 + $0x70] sm:$0xff]  ;;  %v592_v63 = vld [vmem:[#allocation12 + $0x68] sm:$0xff] }
 0x183   : > { %599 = vmatpush.xpose.msra.mxu0 %v594_v61  ;;  %v591_v0 = vld [vmem:[#allocation12 + $0x60] sm:$0xff]  ;;  %v590_v1 = vld [vmem:[#allocation12 + $0x58] sm:$0xff]  ;;  %v589_v2 = vld [vmem:[#allocation12 + $0x50] sm:$0xff] }
 0x184   : > { %v588_v3 = vld [vmem:[#allocation12 + $0x48] sm:$0xff]  ;;  %v587_v4 = vld [vmem:[#allocation12 + $0x40] sm:$0xff]  ;;  %v586_v5 = vld [vmem:[#allocation12 + $0x38] sm:$0xff] }
 0x185   : > { %v636_v6 = vld [vmem:[#allocation12 + $0xf8] sm:$0xff]  ;;  %v585_v7 = vld [vmem:[#allocation12 + $0x30] sm:$0xff]  ;;  %v584_v9 = vld [vmem:[#allocation12 + $0x28] sm:$0xff] }
 0x186   : > { %642 = vmatpush.xpose.msra.mxu1 %v636_v6  ;;  %v635_v8 = vld [vmem:[#allocation12 + $0xf0] sm:$0xff]  ;;  %v634_v10 = vld [vmem:[#allocation12 + $0xe8] sm:$0xff]  ;;  %v583_v11 = vld [vmem:[#allocation12 + $0x20] sm:$0xff] }
 0x187   : > { %600 = vmatpush.xpose.msra.mxu0 %v593_v62  ;;  %v633_v12 = vld [vmem:[#allocation12 + $0xe0] sm:$0xff]  ;;  %v582_v13 = vld [vmem:[#allocation12 + $0x18] sm:$0xff]  ;;  %v581_v15 = vld [vmem:[#allocation12 + $0x10] sm:$0xff] }
 0x188   : > { %v632_v14 = vld [vmem:[#allocation12 + $0xd8] sm:$0xff]  ;;  %v631_v16 = vld [vmem:[#allocation12 + $0xd0] sm:$0xff]  ;;  %v580_v17 = vld [vmem:[#allocation12 + $0x8] sm:$0xff] }
 0x189   : > { %v630_v18 = vld [vmem:[#allocation12 + $0xc8] sm:$0xff]  ;;  %v579_v19 = vld [vmem:[#allocation12] sm:$0xff]  ;;  %v578_v21 = vld [vmem:[#allocation2] sm:$0xff] }
 0x18a   : > { %643 = vmatpush.xpose.msra.mxu1 %v635_v8  ;;  %v629_v20 = vld [vmem:[#allocation12 + $0xc0] sm:$0xff]  ;;  %v628_v22 = vld [vmem:[#allocation12 + $0xb8] sm:$0xff]  ;;  %v627_v23 = vld [vmem:[#allocation12 + $0xb0] sm:$0xff] }
 0x18b   : > { %601 = vmatpush.xpose.msra.mxu0 %v592_v63  ;;  %v626_v24 = vld [vmem:[#allocation12 + $0xa8] sm:$0xff]  ;;  %v625_v25 = vld [vmem:[#allocation12 + $0xa0] sm:$0xff]  ;;  %v624_v26 = vld [vmem:[#allocation12 + $0x98] sm:$0xff] }
 0x18c   : > { %v623_v27 = vld [vmem:[#allocation12 + $0x90] sm:$0xff]  ;;  %v622_v28 = vld [vmem:[#allocation12 + $0x88] sm:$0xff]  ;;  %v621_v29 = vld [vmem:[#allocation12 + $0x80] sm:$0xff] }
 0x18d   : > { %v678_v30 = vld [vmem:[#allocation13 + $0x78] sm:$0xff]  ;;  %v677_v31 = vld [vmem:[#allocation13 + $0x70] sm:$0xff]  ;;  %v676_v32 = vld [vmem:[#allocation13 + $0x68] sm:$0xff] }
 0x18e   : > { %644 = vmatpush.xpose.msra.mxu1 %v634_v10  ;;  %683 = vmatpush.xpose.msra.mxu2 %v678_v30  ;;  %v675_v33 = vld [vmem:[#allocation13 + $0x60] sm:$0xff]  ;;  %v674_v34 = vld [vmem:[#allocation13 + $0x58] sm:$0xff]  ;;  %v673_v35 = vld [vmem:[#allocation13 + $0x50] sm:$0xff] }
 0x18f   : > { %602 = vmatpush.xpose.msra.mxu0 %v591_v0  ;;  %v985_v36 = vld [vmem:[%s1522_s6] ss:$0 sm:$0xff]  ;;  %v672_v38 = vld [vmem:[#allocation13 + $0x48] sm:$0xff]  ;;  %v671_v40 = vld [vmem:[#allocation13 + $0x40] sm:$0xff] }
 0x190   : > { %v670_v41 = vld [vmem:[#allocation13 + $0x38] sm:$0xff]  ;;  %v669_v43 = vld [vmem:[#allocation13 + $0x30] sm:$0xff]  ;;  %v668_v44 = vld [vmem:[#allocation13 + $0x28] sm:$0xff] }
 0x191   : > { %v667_v45 = vld [vmem:[#allocation13 + $0x20] sm:$0xff]  ;;  %v666_v46 = vld [vmem:[#allocation13 + $0x18] sm:$0xff]  ;;  %v665_v47 = vld [vmem:[#allocation13 + $0x10] sm:$0xff] }
 0x192   : > { %645 = vmatpush.xpose.msra.mxu1 %v633_v12  ;;  %684 = vmatpush.xpose.msra.mxu2 %v677_v31  ;;  %v664_v48 = vld [vmem:[#allocation13 + $0x8] sm:$0xff]  ;;  %v663_v49 = vld [vmem:[#allocation13] sm:$0xff]  ;;  %v986_v50 = vld [vmem:[%s1522_s6 + $0x1] ss:$0 sm:$0xff] }
 0x193   : > { %603 = vmatpush.xpose.msra.mxu0 %v590_v1  ;;  %v987_v54 = vld [vmem:[%s1524_s8] ss:$0 sm:$0xff] }
 0x196   : > { %646 = vmatpush.xpose.msra.mxu1 %v632_v14  ;;  %685 = vmatpush.xpose.msra.mxu2 %v676_v32 }
 0x197   : > { %604 = vmatpush.xpose.msra.mxu0 %v589_v2 }
 0x19a   : > { %647 = vmatpush.xpose.msra.mxu1 %v631_v16  ;;  %686 = vmatpush.xpose.msra.mxu2 %v675_v33 }
 0x19b   : > { %605 = vmatpush.xpose.msra.mxu0 %v588_v3 }
 0x19e   : > { %648 = vmatpush.xpose.msra.mxu1 %v630_v18  ;;  %687 = vmatpush.xpose.msra.mxu2 %v674_v34 }
 0x19f   : > { %606 = vmatpush.xpose.msra.mxu0 %v587_v4 }
 0x1a2   : > { %649 = vmatpush.xpose.msra.mxu1 %v629_v20  ;;  %688 = vmatpush.xpose.msra.mxu2 %v673_v35 }
 0x1a3   : > { %607 = vmatpush.xpose.msra.mxu0 %v586_v5 }
 0x1a6   : > { %650 = vmatpush.xpose.msra.mxu1 %v628_v22  ;;  %689 = vmatpush.xpose.msra.mxu2 %v672_v38 }
 0x1a7   : > { %608 = vmatpush.xpose.msra.mxu0 %v585_v7 }
 0x1aa   : > { %651 = vmatpush.xpose.msra.mxu1 %v627_v23  ;;  %690 = vmatpush.xpose.msra.mxu2 %v671_v40 }
 0x1ab   : > { %609 = vmatpush.xpose.msra.mxu0 %v584_v9 }
 0x1ae   : > { %652 = vmatpush.xpose.msra.mxu1 %v626_v24  ;;  %691 = vmatpush.xpose.msra.mxu2 %v670_v41 }
 0x1af   : > { %610 = vmatpush.xpose.msra.mxu0 %v583_v11 }
 0x1b2   : > { %653 = vmatpush.xpose.msra.mxu1 %v625_v25  ;;  %692 = vmatpush.xpose.msra.mxu2 %v669_v43 }
 0x1b3   : > { %611 = vmatpush.xpose.msra.mxu0 %v582_v13 }
 0x1b6   : > { %654 = vmatpush.xpose.msra.mxu1 %v624_v26  ;;  %693 = vmatpush.xpose.msra.mxu2 %v668_v44 }
 0x1b7   : > { %612 = vmatpush.xpose.msra.mxu0 %v581_v15 }
 0x1ba   : > { %655 = vmatpush.xpose.msra.mxu1 %v623_v27  ;;  %694 = vmatpush.xpose.msra.mxu2 %v667_v45 }
 0x1bb   : > { %613 = vmatpush.xpose.msra.mxu0 %v580_v17 }
 0x1be   : > { %656 = vmatpush.xpose.msra.mxu1 %v622_v28  ;;  %695 = vmatpush.xpose.msra.mxu2 %v666_v46 }
 0x1bf   : > { %614 = vmatpush.xpose.msra.mxu0 %v579_v19 }
 0x1c2   : > { %615 = vmatmul.f32.vlgmr.msra.gmra.mxu0 %v578_v21  ;;  %657 = vmatpush.xpose.msra.mxu1 %v621_v29 }
 0x1c3   : > { %696 = vmatpush.xpose.msra.mxu2 %v665_v47 }
 0x1c7   : > { %697 = vmatpush.xpose.msra.mxu2 %v664_v48 }
 0x1cb   : > { %698 = vmatpush.xpose.msra.mxu2 %v663_v49 }
 0x23f   : > { %v616_v37 = vpop.f32.mrf.mxu0 }
 0x240   : > { %v617_v39 = vadd.f32 %v985_v36, %v616_v37 }
 0x242   : > { %988 = vtanh.f32 %v617_v39 }
 0x248   : > { %v989_v42 = vpop.eup %988 }
 0x249   : > { %658 = vmatmul.f32.vlgmr.msra.gmra.mxu1 %v989_v42 }
 0x2c6   : > { %v659_v51 = vpop.f32.mrf.mxu1 }
 0x2c7   : > { %v660_v52 = vadd.f32 %v986_v50, %v659_v51 }
 0x2c9   : > { %990 = vtanh.f32 %v660_v52 }
 0x2cf   : > { %v991_v53 = vpop.eup %990 }
 0x2d0   : > { %699 = vmatmul.f32.vlgmr.msra.gmra.mxu2 %v991_v53 }
 0x353   : > { %v700_v55 = vpop.f32.mrf.mxu2 }
 0x354   : > { %v701_v56 = vadd.f32 %v987_v54, %v700_v55 }
 0x356   : > { %703 = vst [vmem:[#allocation15] sm:$0xff] %v701_v56 }
 0x357 PF: > { %s1542_s26 = sadd.s32 4294967295, %s1266_s14   ;;  %s714_s15 = sshll.u32 %s1525_s9, 4  ;;  %s715_s15 = int_to_ptr.hbm [resolvable:$true] %s714_s15 }
 0x358   : > { %p925_p3 = scmp.eq.s32.totalorder %s1542_s26, 3  ;;  %s1276_s24 = smov [#allocation15]  }
 0x359   : > { %s712_s19 = sshll.u32 %s1276_s24, 4  ;;  %s713_s19 = int_to_ptr.vmem [resolvable:$true] %s712_s19 }
 0x35a   : > { %891 = dma.vmem_to_hbm [thread:$0]  (%p925_p3), %s713_s19, 128, %s715_s15, [#allocation6]  }
 0x35b   : > { %1241 = dma.done.wait (%p925_p3), [#allocation6], 128  }
 0x35c   : > { %1243 = vsyncadd (%p925_p3), [#allocation6], 4294967168 }
 0x35d PF: > { %s26_s14 = sadd.s32 1, %s1266_s14   ;;  %s1543_s30 = smov %s1250_s10 }
 0x35e   : > { %p23_p4 = scmp.ge.s32.totalorder %s26_s14, 6   ;;  %s1544_s10 = smov %s1254_s11 }
 0x35f   : > { %s1545_s11 = smov %s1442_s17  ;;  %s1546_s12 = smov %s1262_s13 }
 0x360   : > { %s1547_s13 = smov %s1549_s25  ;;  %25 = sbr.rel (!%p23_p4) target bundleno = 12 (0xc), region = 124 }
 0x365   :  { %728 = vsyncpa [#allocation5], 1 }
 0x366   :  { %730 = vsyncpa [#allocation5 + $0x1], 1 }
 0x367   :  { %731 = vsyncpa [#allocation8], 1 }
 0x368   :  { %732 = vsyncpa [#allocation11], 1 }
 0x369   :  { %733 = vsyncpa [#allocation14], 1 }
 0x36a   :  { %734 = vsyncpa [#allocation6], 1 }
 0x36b   :  { %736 = vsyncpa [#allocation6 + $0x1], 1 }

</bundles_post_ra>
